<compile_context>
chip_gen: v6e
topology: v6e:2x2x1
jax: 0.10.0
libtpu: 0.0.40
codegen_flags: <defaults>
</compile_context>

<pallas_src>
import functools

import jax
import jax.numpy as jnp
from jax import lax
from jax.experimental import pallas as pl
from jax.experimental.pallas import tpu as pltpu

EPS = 1e-07


def _ce_kernel(b_total, t_ref, x_ref, o_ref):
    i = pl.program_id(0)

    x = x_ref[...]                                   # (TB, C) native dtype
    tb = x.shape[0]
    tgt = t_ref[...]                                 # (TB, 1) int32

    # Row max in the native dtype (bf16-packed vregs on v6e/v7x); single f32
    # upcast feeds exp.  Exponent is <= 0 so no overflow even on garbage rows.
    m = jnp.max(x, axis=1, keepdims=True)                        # (TB, 1)
    e = jnp.exp(x.astype(jnp.float32) - m.astype(jnp.float32))   # (TB, C) f32
    denom = jnp.sum(e, axis=1, keepdims=True)                    # (TB, 1)

    # Target numerator: mask fused onto the exponentials (exactly one column
    # matches per row), so the raw logits need no second full-tile pass.
    col = lax.broadcasted_iota(jnp.int32, e.shape, 1)            # (TB, C)
    e_t = jnp.sum(jnp.where(col == tgt, e, 0.0), axis=1, keepdims=True)

    # 1/denom on the EUP (approx) + one Newton step for full f32 accuracy.
    inv = pl.reciprocal(denom, approx=True)
    inv = inv * (2.0 - denom * inv)

    loss = -jnp.log(e_t * inv + EPS)                             # (TB, 1)

    # Mask rows past the true batch size (ragged last tile reads garbage;
    # select does not propagate NaN/inf from the unselected branch).
    row = lax.broadcasted_iota(jnp.int32, (tb, 1), 0) + i * tb
    loss = jnp.where(row < b_total, loss, 0.0)

    # Per-tile partial sum -> disjoint output block (parallel-safe on v7x).
    o_ref[...] = jnp.sum(loss).reshape(1, 1, 1)


def _round_up(x, m):
    return ((x + m - 1) // m) * m


def my_ce(inputs, targets, *, tb=None):
    """inputs: (B, C) float (f32 or bf16), targets: (B,) int -> scalar f32 loss."""
    B, C = inputs.shape

    if tb is None:
        # ~2 MiB of f32-equivalent per logits tile.  In-kernel temporaries
        # (f32 upcast + exp + iota + masked exp) are a few tile-equivalents on
        # top of the 2x pipelined input buffers; the explicit 40 MiB scoped
        # limit below covers that on every generation (incl. v7x's 64 MiB).
        budget_rows = (2 << 20) // max(1, C * 4)
        tb = max(8, min(_round_up(B, 8), (budget_rows // 8) * 8))
    tb = max(8, (tb // 8) * 8)

    num_tiles = pl.cdiv(B, tb)
    targets2d = targets.astype(jnp.int32).reshape(B, 1)

    out = pl.pallas_call(
        functools.partial(_ce_kernel, B),
        out_shape=jax.ShapeDtypeStruct((num_tiles, 1, 1), jnp.float32),
        grid_spec=pltpu.PrefetchScalarGridSpec(
            num_scalar_prefetch=0,
            grid=(num_tiles,),
            in_specs=[
                pl.BlockSpec((tb, 1), lambda i: (i, 0)),   # targets tile
                pl.BlockSpec((tb, C), lambda i: (i, 0)),   # logits tile
            ],
            out_specs=pl.BlockSpec((1, 1, 1), lambda i: (i, 0, 0)),
        ),
        compiler_params=pltpu.CompilerParams(
            # Disjoint per-tile outputs, no shared state -> batch axis can be
            # split across both TensorCores on v7x.
            dimension_semantics=("parallel",),
            vmem_limit_bytes=40 << 20,
        ),
    )(targets2d, inputs)

    # Final reduction over the (tiny) per-tile partial sums; divide by the
    # FULL batch size exactly as the PyTorch module does.
    return jnp.sum(out) / jnp.float32(B)


def my_ce_ref(inputs, targets):
    """Pure-JAX reference matching the PyTorch module (weight=None)."""
    p = jax.nn.softmax(inputs.astype(jnp.float32), axis=1)
    p_t = p[jnp.arange(inputs.shape[0]), targets]
    loss = -jnp.log(p_t + EPS)
    return jnp.sum(loss) / inputs.shape[0]


if __name__ == "__main__":
    key = jax.random.PRNGKey(0)
    k1, k2, k3, k4 = jax.random.split(key, 4)

    # Small shape consistent with the module's forward (batch=8, classes=16).
    B, C = 8, 16
    inputs = jax.random.normal(k1, (B, C), dtype=jnp.float32)
    targets = jax.random.randint(k2, (B,), 0, C, dtype=jnp.int32)

    out = jax.block_until_ready(my_ce(inputs, targets))
    ref = my_ce_ref(inputs, targets)
    assert jnp.allclose(out, ref, atol=1e-5, rtol=1e-5), (out, ref)

    # Exercise the multi-tile + ragged (un-padded) last-block masked path.
    B2, C2 = 20, 256
    inputs2 = jax.random.normal(k3, (B2, C2), dtype=jnp.float32)
    targets2 = jax.random.randint(k4, (B2,), 0, C2, dtype=jnp.int32)

    out2 = jax.block_until_ready(my_ce(inputs2, targets2, tb=8))
    ref2 = my_ce_ref(inputs2, targets2)
    assert jnp.allclose(out2, ref2, atol=1e-5, rtol=1e-5), (out2, ref2)

    print("KERNEL_OK")
</pallas_src>

<mosaic_0001>
module attributes {stable_mosaic.version = 11 : i64} {
  func.func @_ce_kernel(%arg0: i32, %arg1: memref<8x1xi32, #tpu.memory_space<vmem>>, %arg2: memref<8x16xf32, #tpu.memory_space<vmem>>, %arg3: memref<1x1x1xf32, #tpu.memory_space<vmem>>) attributes {dimension_semantics = [#tpu.dimension_semantics<parallel>], iteration_bounds = array<i64: 1>, scalar_prefetch = 0 : i64, scratch_operands = 0 : i64, tpu.core_type = #tpu.core_type<tc>, window_params = [{transform_indices = @transform_0, window_bounds = array<i64: 8, 1>}, {transform_indices = @transform_1, window_bounds = array<i64: 8, 16>}, {transform_indices = @transform_2, window_bounds = array<i64: 1, 1, 1>}]} {
    %c0 = arith.constant 0 : index
    %c0_0 = arith.constant 0 : index
    %0 = vector.load %arg2[%c0, %c0_0] : memref<8x16xf32, #tpu.memory_space<vmem>>, vector<8x16xf32>
    %c0_1 = arith.constant 0 : index
    %c0_2 = arith.constant 0 : index
    %1 = vector.load %arg1[%c0_1, %c0_2] : memref<8x1xi32, #tpu.memory_space<vmem>>, vector<8x1xi32>
    %cst = arith.constant dense<0xFF800000> : vector<8xf32>
    %2 = vector.multi_reduction <maximumf>, %0, %cst [1] : vector<8x16xf32> to vector<8xf32>
    %3 = vector.shape_cast %2 : vector<8xf32> to vector<8x1xf32>
    %4 = vector.broadcast %3 : vector<8x1xf32> to vector<8x16xf32>
    %5 = arith.subf %0, %4 : vector<8x16xf32>
    %6 = math.exp %5 : vector<8x16xf32>
    %cst_3 = arith.constant dense<0.000000e+00> : vector<8xf32>
    %7 = vector.multi_reduction <add>, %6, %cst_3 [1] : vector<8x16xf32> to vector<8xf32>
    %8 = vector.shape_cast %7 : vector<8xf32> to vector<8x1xf32>
    %9 = tpu.iota {dimensions = array<i32: 1>} : vector<8x16xi32>
    %10 = vector.broadcast %1 : vector<8x1xi32> to vector<8x16xi32>
    %11 = arith.cmpi eq, %9, %10 : vector<8x16xi32>
    %cst_4 = arith.constant 0.000000e+00 : f32
    %12 = vector.broadcast %cst_4 : f32 to vector<8x16xf32>
    %13 = arith.select %11, %6, %12 : vector<8x16xi1>, vector<8x16xf32>
    %cst_5 = arith.constant dense<0.000000e+00> : vector<8xf32>
    %14 = vector.multi_reduction <add>, %13, %cst_5 [1] : vector<8x16xf32> to vector<8xf32>
    %15 = vector.shape_cast %14 : vector<8xf32> to vector<8x1xf32>
    %16 = tpu.reciprocal %8 {approx = true} : vector<8x1xf32> -> vector<8x1xf32>
    %17 = arith.mulf %8, %16 : vector<8x1xf32>
    %cst_6 = arith.constant 2.000000e+00 : f32
    %18 = vector.broadcast %cst_6 : f32 to vector<8x1xf32>
    %19 = arith.subf %18, %17 : vector<8x1xf32>
    %20 = arith.mulf %16, %19 : vector<8x1xf32>
    %21 = arith.mulf %15, %20 : vector<8x1xf32>
    %cst_7 = arith.constant 1.000000e-07 : f32
    %22 = vector.broadcast %cst_7 : f32 to vector<8x1xf32>
    %23 = arith.addf %21, %22 : vector<8x1xf32>
    %24 = math.log %23 : vector<8x1xf32>
    %cst_8 = arith.constant 0.000000e+00 : f32
    %25 = vector.broadcast %cst_8 : f32 to vector<8x1xf32>
    %26 = arith.subf %25, %24 : vector<8x1xf32>
    %27 = tpu.iota {dimensions = array<i32: 0>} : vector<8x1xi32>
    %c8_i32 = arith.constant 8 : i32
    %28 = arith.muli %arg0, %c8_i32 : i32
    %29 = vector.broadcast %28 : i32 to vector<8x1xi32>
    %30 = arith.addi %27, %29 : vector<8x1xi32>
    %c8_i32_9 = arith.constant 8 : i32
    %31 = vector.broadcast %c8_i32_9 : i32 to vector<8x1xi32>
    %32 = arith.cmpi slt, %30, %31 : vector<8x1xi32>
    %cst_10 = arith.constant 0.000000e+00 : f32
    %33 = vector.broadcast %cst_10 : f32 to vector<8x1xf32>
    %34 = arith.select %32, %26, %33 : vector<8x1xi1>, vector<8x1xf32>
    %35 = vector.shape_cast %34 : vector<8x1xf32> to vector<1x8x1xf32>
    %cst_11 = arith.constant dense<0.000000e+00> : vector<1xf32>
    %36 = vector.multi_reduction <add>, %35, %cst_11 [1, 2] : vector<1x8x1xf32> to vector<1xf32>
    %37 = vector.shape_cast %36 : vector<1xf32> to vector<1x1x1xf32>
    %38 = vector.extract %37[0, 0, 0] : f32 from vector<1x1x1xf32>
    %39 = vector.broadcast %38 : f32 to vector<1x1x1xf32>
    %c0_12 = arith.constant 0 : index
    %c0_13 = arith.constant 0 : index
    %c0_14 = arith.constant 0 : index
    %40 = vector.load %arg3[%c0_12, %c0_13, %c0_14] : memref<1x1x1xf32, #tpu.memory_space<vmem>>, vector<1x1x1xf32>
    tpu.vector_store %arg3[%c0_12, %c0_13, %c0_14], %39 {strides = array<i32>} : memref<1x1x1xf32, #tpu.memory_space<vmem>>, vector<1x1x1xf32>,
    return
  }
  func.func @transform_0(%arg0: i32) -> (i32, i32) {
    %c0_i32 = arith.constant 0 : i32
    %c0_i32_0 = arith.constant 0 : i32
    return %arg0, %c0_i32 : i32, i32
  }
  func.func @transform_1(%arg0: i32) -> (i32, i32) {
    %c0_i32 = arith.constant 0 : i32
    %c0_i32_0 = arith.constant 0 : i32
    return %arg0, %c0_i32 : i32, i32
  }
  func.func @transform_2(%arg0: i32) -> (i32, i32, i32) {
    %c0_i32 = arith.constant 0 : i32
    %c0_i32_0 = arith.constant 0 : i32
    %c0_i32_1 = arith.constant 0 : i32
    return %arg0, %c0_i32, %c0_i32_0 : i32, i32, i32
  }
}

</mosaic_0001>

<bundles_post_ra>
// kernel: tpu_custom_call.1
= control target key start
LH: loop header
LB: loop body
LE: loop exit
PB: predicated region body
PF: predicated region fallthrough
CT: control target
= control target key end

     0   :  { %vm14_vm0 = vcmask 130048   ;;  %s140_s0 = inlined_call_operand.vmem [shape: s32[8,1], index: 0, kind: input, shape index: {}]   ;;  %s141_s1 = inlined_call_operand.vmem [shape: f32[8,16], index: 1, kind: input, shape index: {}]   ;;  %s142_s2 = inlined_call_operand.hbm [shape: f32[1,1,1], index: 2, kind: output, shape index: {}]  }
   0x1   :  { %v12_v0 = vld [vmem:[%s141_s1] sm:$0xff] }
   0x2   :  { %7 = vsyncpa [#allocation3], 0  ;;  %v15_v1 = vsel %vm14_vm0, %v12_v0, -inf  ;;  %v111_v2 = vmov 0   ;;  %v13_v3 = vld [vmem:[%s140_s0] sm:$0xff]  ;;  %v24_v7 = vlaneseq  ;;  %vm50_vm2 = vcmask 7168  }
   0x3   :  { %82 = vset.pattern.permute.xlu0 %v111_v2  ;;  %s112_s0 = smov [#allocation2]   ;;  %vm62_vm3 = vcmask 0  }
   0x4   :  { %16 = vmax.xlane.f32.xlu0 %v15_v1  ;;  %v25_v8 = vand.u32 127, %v24_v7  ;;  %s70_s1 = sshll.u32 %s112_s0, 4  ;;  %s71_s1 = int_to_ptr.vmem [resolvable:$true] %s70_s1 }
   0x5   :  { %s89_s14 = scalar_lea.vmem %s71_s1, 16  ;;  %s93_s15 = scalar_lea.vmem %s71_s1, 32 }
   0x6   :  { %p90_p0 = scmp.ne.s32.totalorder %s71_s1, %s89_s14  ;;  %p94_p1 = scmp.lt.s32.totalorder %s71_s1, %s71_s1 }
   0x7   :  { %p95_p2 = scmp.lt.s32.totalorder %s93_s15, %s89_s14 }
   0x9   :  { %p96_p3 = por %p95_p2, %p94_p1 }
   0xb   :  { %p97_p4 = pnand %p96_p3, %p90_p0 }
  0x1a   :  { %27 = vperm.xlu0 %82, %v13_v3  }
  0x8d   :  { %v17_v4 = vpop.xlane.xlu0 %16 }
  0x8e   :  { %v18_v5 = vsub.f32 %v12_v0, %v17_v4 }
  0x90   :  { %v19_v6 = vmul.f32 1.442695, %v18_v5 }
  0x92   :  { %83 = vpow2.f32 %v19_v6 }
  0x95   :  { %v28_v9 = vpop.permute.xlu0 %27 }
  0x96   :  { %vm29_vm1 = vcmp.eq.s32.totalorder %v25_v8, %v28_v9 }
  0x9f   :  { %v84_v10 = vpop.eup %83 }
  0xa0   :  { %v21_v11 = vsel %vm14_vm0, %v84_v10, 0.0  ;;  %v30_v12 = vsel %vm29_vm1, %v84_v10, 0.0 }
  0xa1   :  { %22 = vadd.xlane.f32.xlu1 %v21_v11  ;;  %v31_v13 = vsel %vm14_vm0, %v30_v12, 0.0 }
  0xa5   :  { %32 = vadd.xlane.f32.xlu1 %v31_v13 }
 0x12a   :  { %v23_v14 = vpop.xlane.xlu1 %22 }
 0x12b   :  { %85 = vrcp.f32 %v23_v14 }
 0x12e   :  { %v33_v19 = vpop.xlane.xlu1 %32 }
 0x138   :  { %v86_v15 = vpop.eup %85 }
 0x139   :  { %v35_v16 = vmul.f32 %v86_v15, %v23_v14 }
 0x13b   :  { %v36_v17 = vsub.f32 2.0, %v35_v16 }
 0x13d   :  { %v37_v18 = vmul.f32 %v86_v15, %v36_v17 }
 0x13f   :  { %v38_v20 = vmul.f32 %v37_v18, %v33_v19 }
 0x141   :  { %v39_v21 = vadd.f32 1e-07, %v38_v20 }
 0x143   :  { %87 = vlog2.f32 %v39_v21 }
 0x150   :  { %v88_v22 = vpop.eup %87 }
 0x151   :  { %v41_v23 = vmul.f32 0.6931472, %v88_v22 }
 0x153   :  { %v42_v24 = vsub.f32 0.0, %v41_v23 }
 0x155   :  { %v51_v25 = vsel %vm50_vm2, %v42_v24, 0.0 }
 0x156   :  { %52 = vadd.xlane.f32.xlu1 %v51_v25 }
 0x1df   :  { %v53_v26 = vpop.xlane.xlu1 %52 }
 0x1e0   :  { %v54_v27 = vrot.slane %v53_v26, 4 }
 0x1e2   :  { %v55_v28 = vadd.f32 %v54_v27, %v53_v26 }
 0x1e4   :  { %v56_v29 = vrot.slane %v55_v28, 2 }
 0x1e6   :  { %v57_v30 = vadd.f32 %v56_v29, %v55_v28 }
 0x1e8   :  { %v58_v31 = vrot.slane %v57_v30, 1 }
 0x1ea   :  { %v59_v32 = vadd.f32 %v58_v31, %v57_v30 }
 0x1ec   :  { %78 = vpush %v59_v32 }
 0x21d   :  { %s79_s13 = spop %78 }
 0x21e   :  { %v61_v33 = vstv %s79_s13 }
 0x21f   :  { %63 = vst.msk [vmem:[#allocation2] sm:$0x1] %vm62_vm3, %v61_v33 }
 0x220   :  { %100 = shalt.err (!%p97_p4)
}
 0x221   :  { %73 = dma.vmem_to_hbm [thread:$0]  %s71_s1, 16, %s142_s2, [#allocation3]  }
 0x222   :  { %109 = dma.done.wait [#allocation3], 16  }
 0x223   :  { %110 = vsyncadd [#allocation3], 4294967280 }
 0x224   :  { %77 = vsyncpa [#allocation3], 1 }

</bundles_post_ra>
